<compile_context>
chip_gen: v5e
topology: v5e:2x2
jax: 0.10.0
libtpu: 0.0.40
codegen_flags: <defaults>
</compile_context>

<pallas_src>
import functools

import jax
import jax.numpy as jnp
import numpy as np
from jax.experimental import pallas as pl
from jax.experimental.pallas import tpu as pltpu

_MAX_BATCH_BLOCK = 16   # cap on the static per-segment unroll inside the kernel


def residual_block_kernel(x_ref, w1_ref, w2_ref, b1_ref, b2_ref,
                          caw1_ref, cab1_ref, caw2_ref, cab2_ref,
                          o_ref, *, seq_len):
    """One grid step: a (Nb, C, Lp) block of whole batch elements."""
    Nb, C, Lp = x_ref.shape
    L = seq_len                     # true (unpadded) sequence length

    # Endpoint masks for the k=3 / padding=1 conv, built once from a (1, Lp)
    # iota and broadcast over channels.
    col = jax.lax.broadcasted_iota(jnp.int32, (1, Lp), 1)
    first_mask = col == 0
    last_mask = col == (L - 1)
    valid = None if L == Lp else (col < L)      # only needed when lane-padded

    # Small parameters, loaded once and reused by every batch segment.
    w1 = [w1_ref[k] for k in range(3)]          # 3 x (C, C) bf16 (BN1 folded)
    w2 = [w2_ref[k] for k in range(3)]          # 3 x (C, C) bf16 (BN2 folded)
    b1 = b1_ref[...]                            # (C, 1) f32  (BN1 shift)
    b2 = b2_ref[...]                            # (C, 1) f32  (BN2 shift)
    caw1 = caw1_ref[...]                        # (Cr, C) f32
    cab1 = cab1_ref[...]                        # (Cr, 1) f32
    caw2 = caw2_ref[...]                        # (C, Cr) f32
    cab2 = cab2_ref[...]                        # (C, 1) f32

    def conv3(inp, w):
        """Conv1d k=3, stride 1, zero padding at l=0 / l=L-1, no bias.

        inp: (C, Lp) f32; w: list of three (C, C) bf16 taps [left|center|right].
        Rolls / selects stay in f32; cast to bf16 only when feeding the MXU."""
        left = jnp.where(first_mask, 0.0, pltpu.roll(inp, shift=1, axis=1))
        right = jnp.where(last_mask, 0.0, pltpu.roll(inp, shift=Lp - 1, axis=1))
        out = jnp.dot(w[0], left.astype(jnp.bfloat16),
                      preferred_element_type=jnp.float32)
        out = out + jnp.dot(w[1], inp.astype(jnp.bfloat16),
                            preferred_element_type=jnp.float32)
        out = out + jnp.dot(w[2], right.astype(jnp.bfloat16),
                            preferred_element_type=jnp.float32)
        return out                                              # (C, Lp) f32

    # Static unroll over the Nb batch segments of this block (Nb is kept
    # small by the wrapper); every segment writes its result directly.
    for n in range(Nb):
        x = x_ref[n]                                            # (C, Lp) f32

        # conv1 (BN1 scale folded) -> BN1 shift -> relu
        h = jnp.maximum(conv3(x, w1) + b1, 0.0)
        # conv2 (BN2 scale folded) -> BN2 shift
        h = conv3(h, w2) + b2

        # Channel attention: AdaptiveAvgPool1d(1) -> 1x1 conv -> relu ->
        # 1x1 conv -> sigmoid (f32 path; mean over the true length only).
        if valid is None:
            pooled = jnp.mean(h, axis=1, keepdims=True)         # (C, 1)
        else:
            pooled = jnp.sum(jnp.where(valid, h, 0.0), axis=1,
                             keepdims=True) * (1.0 / L)
        a = jnp.dot(caw1, pooled, preferred_element_type=jnp.float32) + cab1
        a = jnp.maximum(a, 0.0)                                 # (Cr, 1)
        a = jnp.dot(caw2, a, preferred_element_type=jnp.float32) + cab2
        ca = jax.nn.sigmoid(a)                                  # (C, 1)

        # Gate, residual (identity downsample), final relu — straight to o_ref.
        o_ref[n] = jnp.maximum(h * ca + x, 0.0).astype(o_ref.dtype)


def _vmem_limit_bytes():
    """Scoped-VMEM limit: ~3/4 of physical, capped at 96 MiB
    (=> ~48 MiB on v7x's 64 MiB/TC, 96 MiB on v5e/v6e's 128 MiB)."""
    try:
        cap = getattr(pltpu.get_tpu_info(), "vmem_capacity_bytes", None)
    except Exception:
        cap = None
    if not cap:
        cap = 64 * 1024 * 1024          # conservative fallback (v7x per-core)
    return int(min(3 * cap // 4, 96 * 1024 * 1024))


def _pick_batch_block(N, C, Lp, vmem_limit_bytes):
    """Batch elements folded into each grid step.

    Budgets against half the scoped-VMEM limit, counting the double-buffered
    f32 in/out blocks plus the per-segment f32 (left/right/h) and bf16 (MXU
    operand) temporaries.  Keeps >= 2 grid steps (DMA/compute overlap +
    megacore) and prefers an even number of steps so both v7x TensorCores get
    equal work."""
    budget = vmem_limit_bytes // 2
    fixed = 2 * 1024 * 1024                       # weights, masks, headroom
    per_batch = C * Lp * (2 * 2 * 4               # in + out, double-buffered f32
                          + 3 * 4                 # left / right / h f32 temps
                          + 3 * 2)                # bf16 MXU operands
    feasible = []
    for nb in range(1, min(N, _MAX_BATCH_BLOCK) + 1):
        if N % nb:
            continue
        steps = N // nb
        if N >= 2 and steps < 2:
            continue
        if fixed + nb * per_batch > budget:
            continue
        feasible.append((nb, steps))
    if not feasible:
        return 1
    even = [nb for nb, steps in feasible if steps % 2 == 0]
    return max(even) if even else max(nb for nb, _ in feasible)


def residual_block(x, params, *, batch_block=None):
    """x: (N, C, L) float32.  in_channels == out_channels, stride == 1."""
    N, C, L = x.shape
    (w1, w2, s1, b1, s2, b2, caw1, cab1, caw2, cab2) = params

    # Lane-pad L up to a multiple of 128 (unmasked full vector stores); the
    # kernel masks pooling with the true L and the tail is cropped below.
    Lp = ((L + 127) // 128) * 128
    xin = x if Lp == L else jnp.pad(x, ((0, 0), (0, 0), (0, Lp - L)))

    vmem_limit = _vmem_limit_bytes()
    Nb = (batch_block if batch_block is not None
          else _pick_batch_block(N, C, Lp, vmem_limit))
    assert N % Nb == 0, (N, Nb)

    # Fold the eval-mode BN scale into the conv weights; taps stay on a
    # leading axis so the kernel reads each (C, C) tap directly.
    w1s = (w1 * s1[None]).astype(jnp.bfloat16)     # (3, C, C)
    w2s = (w2 * s2[None]).astype(jnp.bfloat16)     # (3, C, C)

    kernel = functools.partial(residual_block_kernel, seq_len=L)

    def full_spec(arr):
        nd = arr.ndim
        return pl.BlockSpec(arr.shape, lambda b, _nd=nd: (0,) * _nd)

    out = pl.pallas_call(
        kernel,
        out_shape=jax.ShapeDtypeStruct((N, C, Lp), x.dtype),
        grid_spec=pltpu.PrefetchScalarGridSpec(
            num_scalar_prefetch=0,
            grid=(N // Nb,),
            in_specs=[pl.BlockSpec((Nb, C, Lp), lambda b: (b, 0, 0)),
                      full_spec(w1s), full_spec(w2s),
                      full_spec(b1), full_spec(b2),
                      full_spec(caw1), full_spec(cab1),
                      full_spec(caw2), full_spec(cab2)],
            out_specs=pl.BlockSpec((Nb, C, Lp), lambda b: (b, 0, 0)),
        ),
        compiler_params=pltpu.CompilerParams(
            dimension_semantics=("parallel",),
            vmem_limit_bytes=vmem_limit),
    )(xin, w1s, w2s, b1, b2, caw1, cab1, caw2, cab2)

    return out if Lp == L else out[:, :, :L]


def reference_forward(x, params):
    """Pure-JAX reference of the same (eval-mode) forward pass.

    Uses the same bf16 conv operands / f32 accumulation as the kernel so the
    comparison isolates kernel bugs rather than dtype policy."""
    (w1, w2, s1, b1, s2, b2, caw1, cab1, caw2, cab2) = params
    N, C, L = x.shape

    def conv3_bn(inp, w, s, b):            # inp (N,C,L), w (3,Co,Ci)
        wf = (w * s[None]).astype(jnp.bfloat16)
        xp = jnp.pad(inp, ((0, 0), (0, 0), (1, 1))).astype(jnp.bfloat16)
        out = jnp.zeros((N, C, L), jnp.float32)
        for k in range(3):
            out = out + jnp.einsum('oc,ncl->nol', wf[k], xp[:, :, k:k + L],
                                   preferred_element_type=jnp.float32)
        return out + b[None]

    h = jnp.maximum(conv3_bn(x, w1, s1, b1), 0.0)
    h = conv3_bn(h, w2, s2, b2)
    pooled = jnp.mean(h, axis=2, keepdims=True)                 # (N, C, 1)
    a = jnp.maximum(jnp.einsum('oc,ncl->nol', caw1, pooled) + cab1[None], 0.0)
    a = jnp.einsum('oc,ncl->nol', caw2, a) + cab2[None]
    ca = jax.nn.sigmoid(a)
    return jnp.maximum(h * ca + x, 0.0)


def make_params(key, C):
    """Deterministic parameter init matching the module's shapes.

    BN uses fresh-module eval-mode stats (mean=0, var=1, gamma=1, beta=0),
    expressed as per-channel scale/shift (scale folded into the conv weights
    in the wrapper)."""
    ks = jax.random.split(key, 6)
    Cr = C // 8
    eps = 1e-5
    # Conv1d(C, C, 3) weights, stored as (3, Cout, Cin) = (tap, out, in).
    w1 = jax.random.normal(ks[0], (3, C, C), jnp.float32) * 0.1
    w2 = jax.random.normal(ks[1], (3, C, C), jnp.float32) * 0.1
    # Folded BatchNorm1d (eval mode).
    scale = jnp.full((C, 1), 1.0 / np.sqrt(1.0 + eps), jnp.float32)
    shift = jnp.zeros((C, 1), jnp.float32)
    s1, b1, s2, b2 = scale, shift, scale, shift
    # Channel-attention 1x1 convs (with bias, as in nn.Conv1d default).
    caw1 = jax.random.normal(ks[2], (Cr, C), jnp.float32) * 0.1
    cab1 = jax.random.normal(ks[3], (Cr, 1), jnp.float32) * 0.1
    caw2 = jax.random.normal(ks[4], (C, Cr), jnp.float32) * 0.1
    cab2 = jax.random.normal(ks[5], (C, 1), jnp.float32) * 0.1
    return (w1, w2, s1, b1, s2, b2, caw1, cab1, caw2, cab2)


if __name__ == "__main__":
    N, C, L = 2, 32, 128          # in_channels == out_channels == 32, stride = 1
    key = jax.random.PRNGKey(0)
    kx, kp = jax.random.split(key)
    x = jax.random.normal(kx, (N, C, L), jnp.float32)
    params = make_params(kp, C)

    out = jax.block_until_ready(residual_block(x, params))
    ref = jax.block_until_ready(reference_forward(x, params))

    assert out.shape == (N, C, L), out.shape
    np.testing.assert_allclose(np.asarray(out), np.asarray(ref),
                               rtol=2e-3, atol=2e-3)
    print("KERNEL_OK")
</pallas_src>

<mosaic_0001>
module attributes {stable_mosaic.version = 11 : i64} {
  func.func @residual_block_kernel(%arg0: i32, %arg1: memref<1x32x128xf32, #tpu.memory_space<vmem>>, %arg2: memref<3x32x32xbf16, #tpu.memory_space<vmem>>, %arg3: memref<3x32x32xbf16, #tpu.memory_space<vmem>>, %arg4: memref<32x1xf32, #tpu.memory_space<vmem>>, %arg5: memref<32x1xf32, #tpu.memory_space<vmem>>, %arg6: memref<4x32xf32, #tpu.memory_space<vmem>>, %arg7: memref<4x1xf32, #tpu.memory_space<vmem>>, %arg8: memref<32x4xf32, #tpu.memory_space<vmem>>, %arg9: memref<32x1xf32, #tpu.memory_space<vmem>>, %arg10: memref<1x32x128xf32, #tpu.memory_space<vmem>>) attributes {dimension_semantics = [#tpu.dimension_semantics<parallel>], iteration_bounds = array<i64: 2>, scalar_prefetch = 0 : i64, scratch_operands = 0 : i64, tpu.core_type = #tpu.core_type<tc>, window_params = [{transform_indices = @transform_0, window_bounds = array<i64: 1, 32, 128>}, {pipeline_mode = #tpu.pipeline_mode<synchronous>, transform_indices = @transform_1, window_bounds = array<i64: 3, 32, 32>}, {pipeline_mode = #tpu.pipeline_mode<synchronous>, transform_indices = @transform_2, window_bounds = array<i64: 3, 32, 32>}, {pipeline_mode = #tpu.pipeline_mode<synchronous>, transform_indices = @transform_3, window_bounds = array<i64: 32, 1>}, {pipeline_mode = #tpu.pipeline_mode<synchronous>, transform_indices = @transform_4, window_bounds = array<i64: 32, 1>}, {pipeline_mode = #tpu.pipeline_mode<synchronous>, transform_indices = @transform_5, window_bounds = array<i64: 4, 32>}, {pipeline_mode = #tpu.pipeline_mode<synchronous>, transform_indices = @transform_6, window_bounds = array<i64: 4, 1>}, {pipeline_mode = #tpu.pipeline_mode<synchronous>, transform_indices = @transform_7, window_bounds = array<i64: 32, 4>}, {pipeline_mode = #tpu.pipeline_mode<synchronous>, transform_indices = @transform_8, window_bounds = array<i64: 32, 1>}, {transform_indices = @transform_9, window_bounds = array<i64: 1, 32, 128>}]} {
    %0 = tpu.iota {dimensions = array<i32: 1>} : vector<1x128xi32>
    %c0_i32 = arith.constant 0 : i32
    %1 = vector.broadcast %c0_i32 : i32 to vector<1x128xi32>
    %2 = arith.cmpi eq, %0, %1 : vector<1x128xi32>
    %c127_i32 = arith.constant 127 : i32
    %3 = vector.broadcast %c127_i32 : i32 to vector<1x128xi32>
    %4 = arith.cmpi eq, %0, %3 : vector<1x128xi32>
    %c0 = arith.constant 0 : index
    %c0_0 = arith.constant 0 : index
    %c0_1 = arith.constant 0 : index
    %5 = vector.load %arg2[%c0, %c0_0, %c0_1] : memref<3x32x32xbf16, #tpu.memory_space<vmem>>, vector<1x32x32xbf16>
    %6 = vector.shape_cast %5 : vector<1x32x32xbf16> to vector<32x32xbf16>
    %c1 = arith.constant 1 : index
    %c0_2 = arith.constant 0 : index
    %c0_3 = arith.constant 0 : index
    %7 = vector.load %arg2[%c1, %c0_2, %c0_3] : memref<3x32x32xbf16, #tpu.memory_space<vmem>>, vector<1x32x32xbf16>
    %8 = vector.shape_cast %7 : vector<1x32x32xbf16> to vector<32x32xbf16>
    %c2 = arith.constant 2 : index
    %c0_4 = arith.constant 0 : index
    %c0_5 = arith.constant 0 : index
    %9 = vector.load %arg2[%c2, %c0_4, %c0_5] : memref<3x32x32xbf16, #tpu.memory_space<vmem>>, vector<1x32x32xbf16>
    %10 = vector.shape_cast %9 : vector<1x32x32xbf16> to vector<32x32xbf16>
    %c0_6 = arith.constant 0 : index
    %c0_7 = arith.constant 0 : index
    %c0_8 = arith.constant 0 : index
    %11 = vector.load %arg3[%c0_6, %c0_7, %c0_8] : memref<3x32x32xbf16, #tpu.memory_space<vmem>>, vector<1x32x32xbf16>
    %12 = vector.shape_cast %11 : vector<1x32x32xbf16> to vector<32x32xbf16>
    %c1_9 = arith.constant 1 : index
    %c0_10 = arith.constant 0 : index
    %c0_11 = arith.constant 0 : index
    %13 = vector.load %arg3[%c1_9, %c0_10, %c0_11] : memref<3x32x32xbf16, #tpu.memory_space<vmem>>, vector<1x32x32xbf16>
    %14 = vector.shape_cast %13 : vector<1x32x32xbf16> to vector<32x32xbf16>
    %c2_12 = arith.constant 2 : index
    %c0_13 = arith.constant 0 : index
    %c0_14 = arith.constant 0 : index
    %15 = vector.load %arg3[%c2_12, %c0_13, %c0_14] : memref<3x32x32xbf16, #tpu.memory_space<vmem>>, vector<1x32x32xbf16>
    %16 = vector.shape_cast %15 : vector<1x32x32xbf16> to vector<32x32xbf16>
    %c0_15 = arith.constant 0 : index
    %c0_16 = arith.constant 0 : index
    %17 = vector.load %arg4[%c0_15, %c0_16] : memref<32x1xf32, #tpu.memory_space<vmem>>, vector<32x1xf32>
    %c0_17 = arith.constant 0 : index
    %c0_18 = arith.constant 0 : index
    %18 = vector.load %arg5[%c0_17, %c0_18] : memref<32x1xf32, #tpu.memory_space<vmem>>, vector<32x1xf32>
    %c0_19 = arith.constant 0 : index
    %c0_20 = arith.constant 0 : index
    %19 = vector.load %arg6[%c0_19, %c0_20] : memref<4x32xf32, #tpu.memory_space<vmem>>, vector<4x32xf32>
    %c0_21 = arith.constant 0 : index
    %c0_22 = arith.constant 0 : index
    %20 = vector.load %arg7[%c0_21, %c0_22] : memref<4x1xf32, #tpu.memory_space<vmem>>, vector<4x1xf32>
    %c0_23 = arith.constant 0 : index
    %c0_24 = arith.constant 0 : index
    %21 = vector.load %arg8[%c0_23, %c0_24] : memref<32x4xf32, #tpu.memory_space<vmem>>, vector<32x4xf32>
    %c0_25 = arith.constant 0 : index
    %c0_26 = arith.constant 0 : index
    %22 = vector.load %arg9[%c0_25, %c0_26] : memref<32x1xf32, #tpu.memory_space<vmem>>, vector<32x1xf32>
    %c0_27 = arith.constant 0 : index
    %c0_28 = arith.constant 0 : index
    %c0_29 = arith.constant 0 : index
    %23 = vector.load %arg1[%c0_27, %c0_28, %c0_29] : memref<1x32x128xf32, #tpu.memory_space<vmem>>, vector<1x32x128xf32>
    %24 = vector.shape_cast %23 : vector<1x32x128xf32> to vector<32x128xf32>
    %c1_i32 = arith.constant 1 : i32
    %25 = tpu.dynamic_rotate %24 by %c1_i32 dim 1 : vector<32x128xf32>, i32 -> vector<32x128xf32>
    %cst = arith.constant 0.000000e+00 : f32
    %26 = vector.shape_cast %2 : vector<1x128xi1> to vector<1x128xi1>
    %27 = vector.broadcast %26 : vector<1x128xi1> to vector<32x128xi1>
    %28 = vector.broadcast %cst : f32 to vector<32x128xf32>
    %29 = arith.select %27, %28, %25 : vector<32x128xi1>, vector<32x128xf32>
    %c127_i32_30 = arith.constant 127 : i32
    %30 = tpu.dynamic_rotate %24 by %c127_i32_30 dim 1 : vector<32x128xf32>, i32 -> vector<32x128xf32>
    %cst_31 = arith.constant 0.000000e+00 : f32
    %31 = vector.shape_cast %4 : vector<1x128xi1> to vector<1x128xi1>
    %32 = vector.broadcast %31 : vector<1x128xi1> to vector<32x128xi1>
    %33 = vector.broadcast %cst_31 : f32 to vector<32x128xf32>
    %34 = arith.select %32, %33, %30 : vector<32x128xi1>, vector<32x128xf32>
    %35 = arith.truncf %29 : vector<32x128xf32> to vector<32x128xbf16>
    %cst_32 = arith.constant dense<0.000000e+00> : vector<32x128xf32>
    %36 = tpu.matmul %6, %35, %cst_32 {dimension_numbers = #tpu.dot_dimension_numbers<[1], [0], [0], [1], [0, 0, 1, 1], [], []>} : vector<32x32xbf16>, vector<32x128xbf16>, vector<32x128xf32> -> vector<32x128xf32>
    %37 = arith.truncf %24 : vector<32x128xf32> to vector<32x128xbf16>
    %cst_33 = arith.constant dense<0.000000e+00> : vector<32x128xf32>
    %38 = tpu.matmul %8, %37, %cst_33 {dimension_numbers = #tpu.dot_dimension_numbers<[1], [0], [0], [1], [0, 0, 1, 1], [], []>} : vector<32x32xbf16>, vector<32x128xbf16>, vector<32x128xf32> -> vector<32x128xf32>
    %39 = arith.addf %36, %38 : vector<32x128xf32>
    %40 = arith.truncf %34 : vector<32x128xf32> to vector<32x128xbf16>
    %cst_34 = arith.constant dense<0.000000e+00> : vector<32x128xf32>
    %41 = tpu.matmul %10, %40, %cst_34 {dimension_numbers = #tpu.dot_dimension_numbers<[1], [0], [0], [1], [0, 0, 1, 1], [], []>} : vector<32x32xbf16>, vector<32x128xbf16>, vector<32x128xf32> -> vector<32x128xf32>
    %42 = arith.addf %39, %41 : vector<32x128xf32>
    %43 = vector.broadcast %17 : vector<32x1xf32> to vector<32x128xf32>
    %44 = arith.addf %42, %43 : vector<32x128xf32>
    %cst_35 = arith.constant 0.000000e+00 : f32
    %45 = vector.broadcast %cst_35 : f32 to vector<32x128xf32>
    %46 = arith.maximumf %44, %45 : vector<32x128xf32>
    %c1_i32_36 = arith.constant 1 : i32
    %47 = tpu.dynamic_rotate %46 by %c1_i32_36 dim 1 : vector<32x128xf32>, i32 -> vector<32x128xf32>
    %cst_37 = arith.constant 0.000000e+00 : f32
    %48 = vector.shape_cast %2 : vector<1x128xi1> to vector<1x128xi1>
    %49 = vector.broadcast %48 : vector<1x128xi1> to vector<32x128xi1>
    %50 = vector.broadcast %cst_37 : f32 to vector<32x128xf32>
    %51 = arith.select %49, %50, %47 : vector<32x128xi1>, vector<32x128xf32>
    %c127_i32_38 = arith.constant 127 : i32
    %52 = tpu.dynamic_rotate %46 by %c127_i32_38 dim 1 : vector<32x128xf32>, i32 -> vector<32x128xf32>
    %cst_39 = arith.constant 0.000000e+00 : f32
    %53 = vector.shape_cast %4 : vector<1x128xi1> to vector<1x128xi1>
    %54 = vector.broadcast %53 : vector<1x128xi1> to vector<32x128xi1>
    %55 = vector.broadcast %cst_39 : f32 to vector<32x128xf32>
    %56 = arith.select %54, %55, %52 : vector<32x128xi1>, vector<32x128xf32>
    %57 = arith.truncf %51 : vector<32x128xf32> to vector<32x128xbf16>
    %cst_40 = arith.constant dense<0.000000e+00> : vector<32x128xf32>
    %58 = tpu.matmul %12, %57, %cst_40 {dimension_numbers = #tpu.dot_dimension_numbers<[1], [0], [0], [1], [0, 0, 1, 1], [], []>} : vector<32x32xbf16>, vector<32x128xbf16>, vector<32x128xf32> -> vector<32x128xf32>
    %59 = arith.truncf %46 : vector<32x128xf32> to vector<32x128xbf16>
    %cst_41 = arith.constant dense<0.000000e+00> : vector<32x128xf32>
    %60 = tpu.matmul %14, %59, %cst_41 {dimension_numbers = #tpu.dot_dimension_numbers<[1], [0], [0], [1], [0, 0, 1, 1], [], []>} : vector<32x32xbf16>, vector<32x128xbf16>, vector<32x128xf32> -> vector<32x128xf32>
    %61 = arith.addf %58, %60 : vector<32x128xf32>
    %62 = arith.truncf %56 : vector<32x128xf32> to vector<32x128xbf16>
    %cst_42 = arith.constant dense<0.000000e+00> : vector<32x128xf32>
    %63 = tpu.matmul %16, %62, %cst_42 {dimension_numbers = #tpu.dot_dimension_numbers<[1], [0], [0], [1], [0, 0, 1, 1], [], []>} : vector<32x32xbf16>, vector<32x128xbf16>, vector<32x128xf32> -> vector<32x128xf32>
    %64 = arith.addf %61, %63 : vector<32x128xf32>
    %65 = vector.broadcast %18 : vector<32x1xf32> to vector<32x128xf32>
    %66 = arith.addf %64, %65 : vector<32x128xf32>
    %cst_43 = arith.constant dense<0.000000e+00> : vector<32xf32>
    %67 = vector.multi_reduction <add>, %66, %cst_43 [1] : vector<32x128xf32> to vector<32xf32>
    %68 = vector.shape_cast %67 : vector<32xf32> to vector<32x1xf32>
    %cst_44 = arith.constant 1.280000e+02 : f32
    %69 = vector.broadcast %cst_44 : f32 to vector<32x1xf32>
    %70 = arith.divf %68, %69 : vector<32x1xf32>
    %cst_45 = arith.constant dense<0.000000e+00> : vector<4x1xf32>
    %71 = tpu.matmul %19, %70, %cst_45 {dimension_numbers = #tpu.dot_dimension_numbers<[1], [0], [0], [1], [0, 0, 1, 1], [], []>} : vector<4x32xf32>, vector<32x1xf32>, vector<4x1xf32> -> vector<4x1xf32>
    %72 = arith.addf %71, %20 : vector<4x1xf32>
    %cst_46 = arith.constant 0.000000e+00 : f32
    %73 = vector.broadcast %cst_46 : f32 to vector<4x1xf32>
    %74 = arith.maximumf %72, %73 : vector<4x1xf32>
    %cst_47 = arith.constant dense<0.000000e+00> : vector<32x1xf32>
    %75 = tpu.matmul %21, %74, %cst_47 {dimension_numbers = #tpu.dot_dimension_numbers<[1], [0], [0], [1], [0, 0, 1, 1], [], []>} : vector<32x4xf32>, vector<4x1xf32>, vector<32x1xf32> -> vector<32x1xf32>
    %76 = arith.addf %75, %22 : vector<32x1xf32>
    %77 = arith.negf %76 : vector<32x1xf32>
    %78 = math.exp %77 : vector<32x1xf32>
    %cst_48 = arith.constant 1.000000e+00 : f32
    %79 = vector.broadcast %cst_48 : f32 to vector<32x1xf32>
    %80 = arith.addf %79, %78 : vector<32x1xf32>
    %81 = arith.divf %79, %80 : vector<32x1xf32>
    %82 = vector.broadcast %81 : vector<32x1xf32> to vector<32x128xf32>
    %83 = arith.mulf %66, %82 : vector<32x128xf32>
    %84 = arith.addf %83, %24 : vector<32x128xf32>
    %cst_49 = arith.constant 0.000000e+00 : f32
    %85 = vector.broadcast %cst_49 : f32 to vector<32x128xf32>
    %86 = arith.maximumf %84, %85 : vector<32x128xf32>
    %c0_50 = arith.constant 0 : index
    %c0_51 = arith.constant 0 : index
    %c0_52 = arith.constant 0 : index
    %87 = vector.load %arg10[%c0_50, %c0_51, %c0_52] : memref<1x32x128xf32, #tpu.memory_space<vmem>>, vector<1x32x128xf32>
    %88 = vector.shape_cast %87 : vector<1x32x128xf32> to vector<32x128xf32>
    %89 = vector.shape_cast %86 : vector<32x128xf32> to vector<1x32x128xf32>
    tpu.vector_store %arg10[%c0_50, %c0_51, %c0_52], %89 {strides = array<i32>} : memref<1x32x128xf32, #tpu.memory_space<vmem>>, vector<1x32x128xf32>,
    return
  }
  func.func @transform_0(%arg0: i32) -> (i32, i32, i32) {
    %c0_i32 = arith.constant 0 : i32
    %c0_i32_0 = arith.constant 0 : i32
    %c0_i32_1 = arith.constant 0 : i32
    return %arg0, %c0_i32, %c0_i32_0 : i32, i32, i32
  }
  func.func @transform_1(%arg0: i32) -> (i32, i32, i32) {
    %c0_i32 = arith.constant 0 : i32
    %c0_i32_0 = arith.constant 0 : i32
    %c0_i32_1 = arith.constant 0 : i32
    %c0_i32_2 = arith.constant 0 : i32
    return %c0_i32, %c0_i32_0, %c0_i32_1 : i32, i32, i32
  }
  func.func @transform_2(%arg0: i32) -> (i32, i32, i32) {
    %c0_i32 = arith.constant 0 : i32
    %c0_i32_0 = arith.constant 0 : i32
    %c0_i32_1 = arith.constant 0 : i32
    %c0_i32_2 = arith.constant 0 : i32
    return %c0_i32, %c0_i32_0, %c0_i32_1 : i32, i32, i32
  }
  func.func @transform_3(%arg0: i32) -> (i32, i32) {
    %c0_i32 = arith.constant 0 : i32
    %c0_i32_0 = arith.constant 0 : i32
    %c0_i32_1 = arith.constant 0 : i32
    return %c0_i32, %c0_i32_0 : i32, i32
  }
  func.func @transform_4(%arg0: i32) -> (i32, i32) {
    %c0_i32 = arith.constant 0 : i32
    %c0_i32_0 = arith.constant 0 : i32
    %c0_i32_1 = arith.constant 0 : i32
    return %c0_i32, %c0_i32_0 : i32, i32
  }
  func.func @transform_5(%arg0: i32) -> (i32, i32) {
    %c0_i32 = arith.constant 0 : i32
    %c0_i32_0 = arith.constant 0 : i32
    %c0_i32_1 = arith.constant 0 : i32
    return %c0_i32, %c0_i32_0 : i32, i32
  }
  func.func @transform_6(%arg0: i32) -> (i32, i32) {
    %c0_i32 = arith.constant 0 : i32
    %c0_i32_0 = arith.constant 0 : i32
    %c0_i32_1 = arith.constant 0 : i32
    return %c0_i32, %c0_i32_0 : i32, i32
  }
  func.func @transform_7(%arg0: i32) -> (i32, i32) {
    %c0_i32 = arith.constant 0 : i32
    %c0_i32_0 = arith.constant 0 : i32
    %c0_i32_1 = arith.constant 0 : i32
    return %c0_i32, %c0_i32_0 : i32, i32
  }
  func.func @transform_8(%arg0: i32) -> (i32, i32) {
    %c0_i32 = arith.constant 0 : i32
    %c0_i32_0 = arith.constant 0 : i32
    %c0_i32_1 = arith.constant 0 : i32
    return %c0_i32, %c0_i32_0 : i32, i32
  }
  func.func @transform_9(%arg0: i32) -> (i32, i32, i32) {
    %c0_i32 = arith.constant 0 : i32
    %c0_i32_0 = arith.constant 0 : i32
    %c0_i32_1 = arith.constant 0 : i32
    return %arg0, %c0_i32, %c0_i32_0 : i32, i32, i32
  }
}

</mosaic_0001>

<bundles_post_ra>
// kernel: tpu_custom_call.1
= control target key start
LH: loop header
LB: loop body
LE: loop exit
PB: predicated region body
PF: predicated region fallthrough
CT: control target
= control target key end

     0   :  { %14 = vsyncpa [#allocation3], 0  ;;  %s1766_s0 = inlined_call_operand.vmem [shape: f32[2,32,128], index: 0, kind: input, shape index: {}]   ;;  %s1767_s1 = inlined_call_operand.hbm [shape: bf16[3,32,32], index: 1, kind: input, shape index: {}]   ;;  %s1768_s2 = inlined_call_operand.hbm [shape: bf16[3,32,32], index: 2, kind: input, shape index: {}]   ;;  %s1769_s3 = inlined_call_operand.vmem [shape: f32[32,1], index: 3, kind: input, shape index: {}]   ;;  %s1770_s4 = inlined_call_operand.vmem [shape: f32[32,1], index: 4, kind: input, shape index: {}]   ;;  %s1771_s5 = inlined_call_operand.vmem [shape: f32[4,32], index: 5, kind: input, shape index: {}]   ;;  %s1772_s6 = inlined_call_operand.vmem [shape: f32[4,1], index: 6, kind: input, shape index: {}]   ;;  %s1773_s7 = inlined_call_operand.vmem [shape: f32[32,4], index: 7, kind: input, shape index: {}]   ;;  %s1774_s8 = inlined_call_operand.vmem [shape: f32[32,1], index: 8, kind: input, shape index: {}]   ;;  %s1775_s9 = inlined_call_operand.hbm [shape: f32[2,32,128], index: 9, kind: output, shape index: {}]  }
   0x1   :  { %15 = vsyncpa [#allocation6], 0 }
   0x2   :  { %16 = vsyncpa [#allocation4], 0 }
   0x3   :  { %18 = vsyncpa [#allocation4 + $0x1], 0  ;;  %s1521_s30 = smov 0   ;;  %s1523_s10 = smov 0  }
   0x4   :  { %s1525_s11 = smov 0   ;;  %s1527_s12 = smov 0  }
   0x5 LB: > { %s1542_s13 = sadd.s32 4294967295, %s1459_s12   ;;  %s1056_s14 = sadd.s32 4294967294, %s1459_s12   ;;  %s1459_s12 = sphi %s1527_s12, %s1786_s12   ;;  %s1455_s11 = sphi %s1525_s11, %s1785_s11   ;;  %s1451_s10 = sphi %s1523_s10, %s1784_s10   ;;  %s1447_s30 = sphi %s1521_s30, %s1783_s30  }
   0x6   : > { %s1546_s15 = sadd.s32 1, %s1459_s12   ;;  %s225_s16 = sadd.s32 1, %s1455_s11 }
   0x7   : > { %s222_s17 = ssub.s32 %s1459_s12, %s1546_s15  ;;  %p235_p0 = scmp.ne.s32.totalorder %s1455_s11, %s1451_s10 }
   0x8   : > { %p223_p1 = scmp.eq.s32.totalorder %s222_s17, 0  ;;  %p236_p2 = scmp.eq.s32.totalorder %s1542_s13, 1 }
   0x9   : > { %p241_p3 = scmp.ne.s32.totalorder %s1451_s10, %s1447_s30  ;;  %p242_p4 = scmp.eq.s32.totalorder %s1056_s14, 1 }
   0xa   : > { %s1557_s18 = scalar_select %p223_p1, %s1455_s11, %s225_s16  }
   0xb   : > { %p1559_p5 = por %p236_p2, %p235_p0  ;;  %p1563_p6 = por %p242_p4, %p241_p3 }
   0xc   : > { %p1057_p7 = scmp.ge.s32.totalorder %s1459_s12, 1  ;;  %p249_p8 = scmp.lt.s32.totalorder %s1459_s12, 3 }
   0xd   : > { %p1221_p9 = scmp.eq.s32.totalorder %s1542_s13, 0  ;;  %s260_s24 = sshll.u32 %s1767_s1, 4  ;;  %s261_s24 = int_to_ptr.hbm [resolvable:$true] %s260_s24 }
   0xe   : > { %p1570_p10 = pnand %p1057_p7, %p249_p8  ;;  %s1461_s25 = smov [#allocation2]  }
   0xf   : > { %s262_s26 = sshll.u32 %s1461_s25, 4  ;;  %s274_s29 = sshll.u32 %s1768_s2, 4  ;;  %s263_s26 = int_to_ptr.vmem [resolvable:$true] %s262_s26  ;;  %s275_s29 = int_to_ptr.hbm [resolvable:$true] %s274_s29 }
  0x10   : > { %p1210_p11 = pneg %p1570_p10  ;;  %s1462_s14 = smov 64  }
  0x11   : > { %s1463_s16 = smov 4   ;;  %s1464_s17 = smov [#allocation5]  }
  0x12   : > { %p1211_p12 = pnand %p1221_p9, %p1210_p11  ;;  %s276_s22 = sshll.u32 %s1464_s17, 4  ;;  %s277_s22 = int_to_ptr.vmem [resolvable:$true] %s276_s22 }
  0x13   : > { %318 = sbr.rel (%p1570_p10) target bundleno = 1185 (0x4a1), region = 56 }
  0x14   : > { %1213 = dma.hbm_to_vmem [thread:$0]  (!%p1211_p12), %s261_s24, 768, %s263_s26, [#allocation3], %s1462_s14, %s1462_s14, %s1463_s16  }
  0x15   : > { %1216 = dma.hbm_to_vmem [thread:$0]  (!%p1211_p12), %s275_s29, 768, %s277_s22, [#allocation6], %s1462_s14, %s1462_s14, %s1463_s16  }
  0x18   : > { %1434 = dma.done.wait (%p1221_p9), [#allocation3], 768  }
  0x19   : > { %1436 = vsyncadd (%p1221_p9), [#allocation3], 4294966528 }
  0x1a   : > { %1438 = dma.done.wait (%p1221_p9), [#allocation6], 768  }
  0x1b   : > { %1440 = vsyncadd (%p1221_p9), [#allocation6], 4294966528  ;;  %p360_p13 = scmp.lt.s32.totalorder %s1542_s13, 1  ;;  %s1465_s27 = smov 127   ;;  %v1186_v8 = vld [vmem:[#allocation2 + $0x18] sm:$0xff]  ;;  %vm462_vm0 = vcmask 261120   ;;  %v366_v10 = vlaneseq }
  0x1c   : > { %s1466_s28 = smov 1   ;;  %v1185_v9 = vld [vmem:[#allocation2 + $0x10] sm:$0xff]  ;;  %v398_v12 = vld [vmem:[%s1769_s3] sm:$0xff]  ;;  %v1467_v13 = vmov 0   ;;  %v399_v22 = vld [vmem:[%s1769_s3 + $0x8] sm:$0xff]  ;;  %vm811_vm6 = vcmask 1043456  }
  0x1d   : > { %s361_s23 = scalar_select %p360_p13, %s1542_s13, 1  ;;  %v367_v11 = vand.u32 127, %v366_v10  ;;  %1289 = vset.pattern.permute.xlu0 %v1467_v13  ;;  %1290 = vset.pattern.permute.xlu1 %v1467_v13  ;;  %v400_v23 = vld [vmem:[%s1769_s3 + $0x10] sm:$0xff]  ;;  %v1187_v26 = vld [vmem:[#allocation2 + $0x20] sm:$0xff]  ;;  %v401_v34 = vld [vmem:[%s1769_s3 + $0x18] sm:$0xff]  ;;  %vm798_vm7 = vcmask 31744  }
  0x1e   : > { %1288 = vset.pattern.permute.xlu2 %v1467_v13  ;;  %v1183_v36 = vld [vmem:[#allocation2] sm:$0xff]  ;;  %v1188_v37 = vld [vmem:[#allocation2 + $0x28] sm:$0xff]  ;;  %v1194_v32 = vld [vmem:[#allocation5 + $0x28] sm:$0xff]  ;;  %s357_s16 = sand.u32 1, %s1451_s10  }
  0x1f   : > { %s1182_s24 = sshll.u32 %s361_s23, 5  ;;  %vm1197_vm1 = vcmp.ne.s32.totalorder %v367_v11, 127  ;;  %576 = vperm.xlu2 %1288, %v400_v23   ;;  %vm1196_vm3 = vcmp.ne.s32.totalorder %v367_v11, 0  ;;  %v1184_v38 = vld [vmem:[#allocation2 + $0x8] sm:$0xff]  ;;  %s1064_s17 = sshll.u32 %s357_s16, 5 }
  0x20   : > { %s364_s26 = scalar_lea.vmem %s1766_s0, %s1182_s24  ;;  %vm1624_vm2 = vmpackc.low %vm1197_vm1, %vm1197_vm1  ;;  %s359_s22 = scalar_lea.vmem [#allocation7], %s1064_s17 }
  0x21   : > { %v1599_v0 = vld [vmem:[%s364_s26 + $0x10] sm:$0xff]  ;;  %v1601_v1 = vld [vmem:[%s364_s26 + $0x18] sm:$0xff]  ;;  %v1603_v2 = vld [vmem:[%s364_s26] sm:$0xff]  ;;  %s1195_s23 = sshll.u32 %s1542_s13, 5  ;;  %s969_s25 = sshll.u32 %s359_s22, 4  ;;  %s970_s25 = int_to_ptr.vmem [resolvable:$true] %s969_s25 }
  0x22   : > { %v1268_v3 = vpack.i.bf16 %v1601_v1, %v1599_v0  ;;  %v1607_v4 = vld [vmem:[%s364_s26 + $0x8] sm:$0xff]  ;;  %v451_v5 = vpack.c.bf16 %v1601_v1, %v1599_v0  ;;  %vm1638_vm4 = vmpackc.low %vm1196_vm3, %vm1196_vm3  ;;  %s968_s24 = scalar_lea.hbm %s1775_s9, %s1195_s23  ;;  %s957_s26 = scalar_lea.sflag [#allocation4], %s357_s16 }
  0x23   : > { %v1278_v6 = vpack.i.bf16 %v1607_v4, %v1603_v2  ;;  %v450_v7 = vpack.c.bf16 %v1607_v4, %v1603_v2  ;;  %s971_s21 = sshll.u32 %s968_s24, 4  ;;  %s1409_s23 = scalar_lea.hbm %s1775_s9, 64  ;;  %s972_s21 = int_to_ptr.hbm [resolvable:$true] %s971_s21 }
  0x24   : > { %1269 = vrot.lane.b32.xlu0 %v1268_v3, %s1465_s27  ;;  %1198 = vmatpush.bf16.msra.mxu2 %v451_v5  ;;  %s1403_s13 = sshra.s32 %s972_s21, 4  ;;  %s1404_s13 = int_to_ptr.hbm [resolvable:$true] %s1403_s13 }
  0x25   : > { %1279 = vrot.lane.b32.xlu1 %v1278_v6, %s1465_s27  ;;  %475 = vmatpush.bf16.msra.mxu0 %v451_v5  ;;  %s1405_s29 = scalar_lea.hbm %s1404_s13, 32  ;;  %p1410_p3 = scmp.lt.s32.totalorder %s1404_s13, %s1775_s9 }
  0x26   : > { %p1406_p0 = scmp.ne.s32.totalorder %s1404_s13, %s1405_s29  ;;  %p1411_p4 = scmp.lt.s32.totalorder %s1409_s23, %s1405_s29 }
  0x27   : > { %581 = vperm.xlu2 %1288, %v401_v34  }
  0x28   : > { %1199 = vmatpush.bf16.msra.mxu2 %v450_v7  ;;  %p1407_p1 = pnand %p1406_p0, %p1559_p5  ;;  %p1412_p7 = por %p1411_p4, %p1410_p3 }
  0x29   : > { %476 = vmatpush.bf16.msra.mxu0 %v450_v7 }
  0x2a   : > { %p1408_p2 = pneg %p1407_p1 }
  0x2b   : > { %1076 = vmatmul.msk.bf16.vlgmr.msra.gmra.mxu2 %vm462_vm0, %v1186_v8 }
  0x2c   : > { %1274 = vrot.lane.b32.xlu0 %v1268_v3, %s1466_s28  ;;  %1075 = vmatmul.msk.bf16.vlgmr.msra.gmra.mxu0 %vm462_vm0, %v1185_v9  ;;  %v403_v3 = vld [vmem:[%s1770_s4 + $0x8] sm:$0xff]  ;;  %p1413_p8 = pnand %p1412_p7, %p1408_p2 }
  0x2d   : > { %1284 = vrot.lane.b32.xlu1 %v1278_v6, %s1466_s28 }
  0x34   : > { %566 = vperm.xlu0 %1289, %v398_v12  }
  0x35   : > { %571 = vperm.xlu1 %1290, %v399_v22  }
  0x79   : > { %v577_v60 = vpop.permute.xlu2 %576 }
  0x81   : > { %v582_v9 = vpop.permute.xlu2 %581 }
  0x96   : > { %v1270_v14 = vpop.permute.xlu0 %1269 }
  0x97   : > { %v1272_v15 = vunpack.i.h.bf16 %v1270_v14  ;;  %v1271_v16 = vunpack.i.l.bf16 %v1270_v14  ;;  %v1280_v17 = vpop.permute.xlu1 %1279 }
  0x98   : > { %v1282_v18 = vunpack.i.h.bf16 %v1280_v17  ;;  %v1281_v19 = vunpack.i.l.bf16 %v1280_v17  ;;  %v402_v17 = vld [vmem:[%s1770_s4] sm:$0xff] }
  0x99   : > { %v1108_v21 = vpack.c.bf16 %v1272_v15, %v1271_v16  ;;  %v405_v16 = vld [vmem:[%s1770_s4 + $0x18] sm:$0xff] }
  0x9a   : > { %v1113_v24 = vpack.c.bf16 %v1282_v18, %v1281_v19  ;;  %v404_v18 = vld [vmem:[%s1770_s4 + $0x10] sm:$0xff]  ;;  %v1191_v19 = vld [vmem:[#allocation5 + $0x10] sm:$0xff] }
  0x9b   : > { %1109 = vmatpush.bf16.msk.msrb.mxu2 %vm1624_vm2, %v1108_v21 }
  0x9e   : > { %v1275_v25 = vpop.permute.xlu0 %1274 }
  0x9f   : > { %v1277_v27 = vunpack.i.h.bf16 %v1275_v25  ;;  %v1276_v28 = vunpack.i.l.bf16 %v1275_v25  ;;  %1114 = vmatpush.bf16.msk.msrb.mxu2 %vm1624_vm2, %v1113_v24  ;;  %v1285_v29 = vpop.permute.xlu1 %1284  ;;  %v1192_v24 = vld [vmem:[#allocation5 + $0x18] sm:$0xff] }
  0xa0   : > { %v1287_v30 = vunpack.i.h.bf16 %v1285_v29  ;;  %v1286_v31 = vunpack.i.l.bf16 %v1285_v29 }
  0xa1   : > { %v1088_v33 = vpack.c.bf16 %v1277_v27, %v1276_v28 }
  0xa2   : > { %1115 = vmatmul.msk.bf16.vlgmr.msrb.gmra.mxu2 %vm462_vm0, %v1187_v26  ;;  %v1093_v35 = vpack.c.bf16 %v1287_v30, %v1286_v31  ;;  %v1189_v30 = vld [vmem:[#allocation5] sm:$0xff] }
  0xa3   : > { %1089 = vmatpush.bf16.msk.msra.mxu1 %vm1638_vm4, %v1088_v33 }
  0xa6   : > { %v567_v48 = vpop.permute.xlu0 %566 }
  0xa7   : > { %1094 = vmatpush.bf16.msk.msra.mxu1 %vm1638_vm4, %v1093_v35  ;;  %v572_v51 = vpop.permute.xlu1 %571 }
  0xa9   : > { %v478_v41 = vpop.f32.mrf.mxu0 }
  0xaa   : > { %1095 = vmatmul.msk.bf16.vlgmr.msra.gmra.mxu1 %vm462_vm0, %v1183_v36 }
  0xae   : > { %v483_v39 = vpop.f32.mrf.mxu2 }
  0xb1   : > { %v480_v46 = vpop.f32.mrf.mxu0 }
  0xb2   : > { %1116 = vmatmul.msk.bf16.gmra.mxu2 %vm462_vm0, %v1188_v37 }
  0xb6   : > { %v485_v40 = vpop.f32.mrf.mxu2 }
  0xba   : > { %1096 = vmatmul.msk.bf16.gmra.mxu1 %vm462_vm0, %v1184_v38 }
 0x125   : > { %v550_v42 = vpop.f32.mrf.mxu2 }
 0x127   : > { %v513_v43 = vpop.f32.mrf.mxu1 }
 0x128   : > { %v514_v44 = vadd.f32 %v513_v43, %v478_v41  ;;  %v1193_v41 = vld [vmem:[#allocation5 + $0x20] sm:$0xff] }
 0x12a   : > { %v560_v47 = vadd.f32 %v550_v42, %v514_v44 }
 0x12c   : > { %v584_v52 = vadd.f32 %v567_v48, %v560_v47 }
 0x12d   : > { %v552_v45 = vpop.f32.mrf.mxu2 }
 0x12e   : > { %v588_v55 = vmax.f32 %v584_v52, 0.0 }
 0x12f   : > { %v515_v49 = vpop.f32.mrf.mxu1 }
 0x130   : > { %v516_v50 = vadd.f32 %v515_v49, %v480_v46 }
 0x132   : > { %v561_v53 = vadd.f32 %v552_v45, %v516_v50 }
 0x134   : > { %v585_v54 = vadd.f32 %v572_v51, %v561_v53 }
 0x135   : > { %v555_v57 = vpop.f32.mrf.mxu2 }
 0x136   : > { %v589_v56 = vmax.f32 %v585_v54, 0.0 }
 0x137   : > { %v518_v58 = vpop.f32.mrf.mxu1 }
 0x138   : > { %v1306_v59 = vpack.i.bf16 %v589_v56, %v588_v55  ;;  %v519_v61 = vadd.f32 %v518_v58, %v483_v39  ;;  %v618_v15 = vpack.c.bf16 %v589_v56, %v588_v55  ;;  %v1190_v39 = vld [vmem:[#allocation5 + $0x8] sm:$0xff] }
 0x13a   : > { %1307 = vrot.lane.b32.xlu0 %v1306_v59, %s1465_s27  ;;  %v562_v62 = vadd.f32 %v555_v57, %v519_v61 }
 0x13c   : > { %v586_v7 = vadd.f32 %v577_v60, %v562_v62 }
 0x13d   : > { %v557_v6 = vpop.f32.mrf.mxu2 }
 0x13e   : > { %v590_v11 = vmax.f32 %v586_v7, 0.0 }
 0x13f   : > { %v520_v63 = vpop.f32.mrf.mxu1 }
 0x140   : > { %v521_v5 = vadd.f32 %v520_v63, %v485_v40 }
 0x142   : > { %v563_v8 = vadd.f32 %v557_v6, %v521_v5  ;;  %738 = vperm.xlu0 %1289, %v403_v3  }
 0x144   : > { %v587_v10 = vadd.f32 %v582_v9, %v563_v8  ;;  %v1468_v9 = vmov 128.0  }
 0x145   : > { %1311 = vrcp.f32 %v1468_v9 }
 0x146   : > { %v591_v12 = vmax.f32 %v587_v10, 0.0 }
 0x148   : > { %v1296_v13 = vpack.i.bf16 %v591_v12, %v590_v11  ;;  %v619_v14 = vpack.c.bf16 %v591_v12, %v590_v11 }
 0x14a   : > { %1297 = vrot.lane.b32.xlu1 %v1296_v13, %s1465_s27  ;;  %1292 = vrot.lane.b32.xlu2 %v1296_v13, %s1466_s28 }
 0x14b   : > { %642 = vmatpush.bf16.msra.mxu3 %v619_v14  ;;  %v1312_v10 = vpop.eup %1311 }
 0x14c   : > { %v764_v11 = vmul.f32 128.0, %v1312_v10  ;;  %vm768_vm5 = vweird.f32 %v1312_v10 }
 0x14e   : > { %v765_v12 = vsub.f32 1.0, %v764_v11 }
 0x14f   : > { %643 = vmatpush.bf16.msra.mxu3 %v618_v15 }
 0x150   : > { %v766_v13 = vmul.f32 %v1312_v10, %v765_v12 }
 0x152   : > { %748 = vperm.xlu1 %1290, %v405_v16   ;;  %1302 = vrot.lane.b32.xlu2 %v1306_v59, %s1466_s28  ;;  %v767_v14 = vadd.f32 %v1312_v10, %v766_v13 }
 0x153   : > { %1125 = vmatmul.msk.bf16.vlgmr.msra.gmra.mxu3 %vm462_vm0, %v1191_v19 }
 0x154   : > { %v769_v15 = vsel %vm768_vm5, %v1312_v10, %v767_v14 }
 0x15a   : > { %733 = vperm.xlu1 %1290, %v402_v17   ;;  %743 = vperm.xlu2 %1288, %v404_v18  }
 0x163   : > { %1126 = vmatmul.msk.bf16.gmra.mxu3 %vm462_vm0, %v1192_v24 }
 0x1a4   : > { %v1293_v21 = vpop.permute.xlu2 %1292 }
 0x1a5   : > { %v1295_v22 = vunpack.i.h.bf16 %v1293_v21  ;;  %v1294_v23 = vunpack.i.l.bf16 %v1293_v21 }
 0x1a7   : > { %v1138_v25 = vpack.c.bf16 %v1295_v22, %v1294_v23 }
 0x1a9   : > { %1139 = vmatpush.bf16.msk.msrb.mxu0 %vm1638_vm4, %v1138_v25  ;;  %v406_v25 = vld [vmem:[%s1771_s5] sm:$0xf] }
 0x1ac   : > { %v1303_v26 = vpop.permute.xlu2 %1302  ;;  %v1308_v31 = vpop.permute.xlu0 %1307 }
 0x1ad   : > { %v1305_v27 = vunpack.i.h.bf16 %v1303_v26  ;;  %v1304_v28 = vunpack.i.l.bf16 %v1303_v26  ;;  %v1310_v36 = vunpack.i.h.bf16 %v1308_v31  ;;  %v1309_v37 = vunpack.i.l.bf16 %v1308_v31  ;;  %v407_v26 = vld [vmem:[%s1772_s6] sm:$0xf]  ;;  %v409_v31 = vld [vmem:[%s1773_s7 + $0x8] sm:$0xff] }
 0x1af   : > { %v1143_v29 = vpack.c.bf16 %v1305_v27, %v1304_v28  ;;  %v1163_v40 = vpack.c.bf16 %v1310_v36, %v1309_v37 }
 0x1b1   : > { %1144 = vmatpush.bf16.msk.msrb.mxu0 %vm1638_vm4, %v1143_v29 }
 0x1b4   : > { %1145 = vmatmul.msk.bf16.vlgmr.msrb.gmra.mxu0 %vm462_vm0, %v1189_v30  ;;  %v739_v49 = vpop.permute.xlu0 %738  ;;  %v744_v56 = vpop.permute.xlu2 %743  ;;  %v408_v30 = vld [vmem:[%s1773_s7] sm:$0xff] }
 0x1bc   : > { %v1298_v33 = vpop.permute.xlu1 %1297 }
 0x1bd   : > { %v1300_v34 = vunpack.i.h.bf16 %v1298_v33  ;;  %v1299_v35 = vunpack.i.l.bf16 %v1298_v33  ;;  %v410_v33 = vld [vmem:[%s1773_s7 + $0x10] sm:$0xff] }
 0x1bf   : > { %v1158_v38 = vpack.c.bf16 %v1300_v34, %v1299_v35  ;;  %v411_v34 = vld [vmem:[%s1773_s7 + $0x18] sm:$0xff]  ;;  %v412_v35 = vld [vmem:[%s1774_s8] sm:$0xff] }
 0x1c1   : > { %1159 = vmatpush.bf16.msk.msrb.mxu1 %vm1624_vm2, %v1158_v38 }
 0x1c4   : > { %1146 = vmatmul.msk.bf16.gmra.mxu0 %vm462_vm0, %v1190_v39  ;;  %v749_v61 = vpop.permute.xlu1 %748  ;;  %v413_v39 = vld [vmem:[%s1774_s8 + $0x8] sm:$0xff] }
 0x1c5   : > { %1164 = vmatpush.bf16.msk.msrb.mxu1 %vm1624_vm2, %v1163_v40 }
 0x1c8   : > { %1165 = vmatmul.msk.bf16.vlgmr.msrb.gmra.mxu1 %vm462_vm0, %v1193_v41 }
 0x1cc   : > { %v734_v7 = vpop.permute.xlu1 %733 }
 0x1d6   : > { %v645_v42 = vpop.f32.mrf.mxu3 }
 0x1d8   : > { %1166 = vmatmul.msk.bf16.gmra.mxu1 %vm462_vm0, %v1194_v32 }
 0x1de   : > { %v647_v44 = vpop.f32.mrf.mxu3 }
 0x1e6   : > { %v650_v51 = vpop.f32.mrf.mxu3 }
 0x1ee   : > { %v652_v58 = vpop.f32.mrf.mxu3 }
 0x231   : > { %v680_v43 = vpop.f32.mrf.mxu0 }
 0x232   : > { %v681_v3 = vadd.f32 %v680_v43, %v645_v42 }
 0x239   : > { %v682_v45 = vpop.f32.mrf.mxu0 }
 0x23a   : > { %v683_v47 = vadd.f32 %v682_v45, %v647_v44  ;;  %v414_v44 = vld [vmem:[%s1774_s8 + $0x10] sm:$0xff] }
 0x241   : > { %v685_v52 = vpop.f32.mrf.mxu0 }
 0x242   : > { %v686_v20 = vadd.f32 %v685_v52, %v650_v51  ;;  %v415_v52 = vld [vmem:[%s1774_s8 + $0x18] sm:$0xff] }
 0x245   : > { %v717_v46 = vpop.f32.mrf.mxu1 }
 0x246   : > { %v727_v6 = vadd.f32 %v717_v46, %v681_v3 }
 0x248   : > { %v1692_v8 = vadd.f32 %v734_v7, %v727_v6 }
 0x249   : > { %v687_v59 = vpop.f32.mrf.mxu0 }
 0x24a   : > { %v688_v60 = vadd.f32 %v687_v59, %v652_v58 }
 0x24d   : > { %v719_v48 = vpop.f32.mrf.mxu1 }
 0x24e   : > { %v728_v50 = vadd.f32 %v719_v48, %v683_v47 }
 0x250   : > { %v1683_v53 = vadd.f32 %v739_v49, %v728_v50 }
 0x252   : > { %757 = vadd.xlane.f32.xlu1 %v1683_v53 }
 0x255   : > { %v722_v54 = vpop.f32.mrf.mxu1 }
 0x256   : > { %v729_v55 = vadd.f32 %v722_v54, %v686_v20 }
 0x258   : > { %v1686_v57 = vadd.f32 %v744_v56, %v729_v55 }
 0x25a   : > { %759 = vadd.xlane.f32.xlu0 %v1686_v57 }
 0x25d   : > { %v724_v62 = vpop.f32.mrf.mxu1 }
 0x25e   : > { %v730_v63 = vadd.f32 %v724_v62, %v688_v60 }
 0x260   : > { %v1689_v5 = vadd.f32 %v749_v61, %v730_v63 }
 0x262   : > { %761 = vadd.xlane.f32.xlu2 %v1689_v5 }
 0x26a   : > { %755 = vadd.xlane.f32.xlu2 %v1692_v8 }
 0x2c5   : > { %v758_v19 = vpop.xlane.xlu1 %757 }
 0x2c6   : > { %v771_v22 = vmul.f32 %v769_v15, %v758_v19 }
 0x2cd   : > { %v760_v16 = vpop.xlane.xlu0 %759 }
 0x2ce   : > { %v772_v21 = vmul.f32 %v769_v15, %v760_v16 }
 0x2d5   : > { %v762_v17 = vpop.xlane.xlu2 %761 }
 0x2d6   : > { %v773_v18 = vmul.f32 %v769_v15, %v762_v17 }
 0x2d8   : > { %789 = vmatpush.msra.mxu2 %v773_v18 }
 0x2da   : > { %790 = vmatpush.msra.mxu2 %v772_v21 }
 0x2dc   : > { %791 = vmatpush.msra.mxu2 %v771_v22 }
 0x2dd   : > { %v756_v23 = vpop.xlane.xlu2 %755 }
 0x2de   : > { %v770_v24 = vmul.f32 %v769_v15, %v756_v23 }
 0x2e0   : > { %792 = vmatpush.msra.mxu2 %v770_v24 }
 0x2e1   : > { %1167 = vmatmul.msk.f32.vlgmr.msra.gmra.mxu2 %vm462_vm0, %v406_v25 }
 0x364   : > { %v794_v27 = vpop.f32.mrf.mxu2 }
 0x365   : > { %v795_v28 = vadd.f32 %v794_v27, %v407_v26 }
 0x367   : > { %v797_v29 = vmax.f32 %v795_v28, 0.0 }
 0x369   : > { %1168 = vmatpush.msk.msrb.mxu3 %vm811_vm6, %v797_v29 }
 0x36a   : > { %1169 = vmatmul.msk.f32.vlgmr.msrb.gmra.mxu3 %vm798_vm7, %v408_v30 }
 0x372   : > { %1170 = vmatmul.msk.f32.gmra.mxu3 %vm798_vm7, %v409_v31 }
 0x37a   : > { %1171 = vmatmul.msk.f32.gmra.mxu3 %vm798_vm7, %v410_v33 }
 0x382   : > { %1172 = vmatmul.msk.f32.gmra.mxu3 %vm798_vm7, %v411_v34 }
 0x3ed   : > { %v832_v36 = vpop.f32.mrf.mxu3 }
 0x3ee   : > { %v833_v37 = vadd.f32 %v832_v36, %v412_v35 }
 0x3f0   : > { %v1173_v38 = vmul.f32 -1.442695, %v833_v37 }
 0x3f2   : > { %1313 = vpow2.f32 %v1173_v38 }
 0x3f5   : > { %v835_v40 = vpop.f32.mrf.mxu3 }
 0x3f6   : > { %v836_v41 = vadd.f32 %v835_v40, %v413_v39 }
 0x3f8   : > { %v1314_v32 = vpop.eup %1313  ;;  %v1174_v42 = vmul.f32 -1.442695, %v836_v41 }
 0x3f9   : > { %v856_v43 = vadd.f32 1.0, %v1314_v32 }
 0x3fa   : > { %1315 = vpow2.f32 %v1174_v42 }
 0x3fb   : > { %1317 = vrcp.f32 %v856_v43  ;;  %v871_v55 = vand.u32 2147483648, %v856_v43  ;;  %v869_v59 = vand.u32 2147483647, %v856_v43  ;;  %vm865_vm9 = vweird.f32 %v856_v43 }
 0x3fd   : > { %v838_v45 = vpop.f32.mrf.mxu3  ;;  %v872_v6 = vor.u32 1.1754944e-38, %v871_v55  ;;  %vm870_vm11 = vcmp.eq.f32.partialorder %v869_v59, 8.507059e+37 }
 0x3fe   : > { %v839_v46 = vadd.f32 %v838_v45, %v414_v44 }
 0x400   : > { %v1316_v47 = vpop.eup %1315  ;;  %v1175_v48 = vmul.f32 -1.442695, %v839_v46 }
 0x401   : > { %v1318_v49 = vpop.eup %1317  ;;  %v857_v50 = vadd.f32 1.0, %v1316_v47 }
 0x402   : > { %1319 = vpow2.f32 %v1175_v48  ;;  %v861_v51 = vmul.f32 %v1318_v49, %v856_v43  ;;  %vm866_vm8 = vweird.f32 %v1318_v49 }
 0x403   : > { %1321 = vrcp.f32 %v857_v50  ;;  %vm867_vm10 = vmor %vm865_vm9, %vm866_vm8  ;;  %v886_v12 = vand.u32 2147483648, %v857_v50  ;;  %v884_v14 = vand.u32 2147483647, %v857_v50  ;;  %vm880_vm13 = vweird.f32 %v857_v50 }
 0x404   : > { %v862_v20 = vsub.f32 1.0, %v861_v51 }
 0x405   : > { %v841_v54 = vpop.f32.mrf.mxu3  ;;  %v887_v19 = vor.u32 1.1754944e-38, %v886_v12  ;;  %vm885_vm15 = vcmp.eq.f32.partialorder %v884_v14, 8.507059e+37 }
 0x406   : > { %v842_v56 = vadd.f32 %v841_v54, %v415_v52  ;;  %v863_v58 = vmul.f32 %v1318_v49, %v862_v20 }
 0x408   : > { %v1320_v60 = vpop.eup %1319  ;;  %v1176_v61 = vmul.f32 -1.442695, %v842_v56  ;;  %v864_v62 = vadd.f32 %v1318_v49, %v863_v58 }
 0x409   : > { %v1322_v63 = vpop.eup %1321  ;;  %v858_v3 = vadd.f32 1.0, %v1320_v60 }
 0x40a   : > { %1323 = vpow2.f32 %v1176_v61  ;;  %v868_v7 = vsel %vm867_vm10, %v1318_v49, %v864_v62  ;;  %v876_v9 = vmul.f32 %v1322_v63, %v857_v50  ;;  %vm881_vm12 = vweird.f32 %v1322_v63 }
 0x40b   : > { %1325 = vrcp.f32 %v858_v3  ;;  %v873_v10 = vsel %vm870_vm11, %v872_v6, %v868_v7  ;;  %vm882_vm14 = vmor %vm880_vm13, %vm881_vm12  ;;  %v901_v25 = vand.u32 2147483648, %v858_v3  ;;  %v899_v27 = vand.u32 2147483647, %v858_v3 }
 0x40c   : > { %922 = vperm.xlu2 %1288, %v873_v10   ;;  %v877_v11 = vsub.f32 1.0, %v876_v9  ;;  %vm895_vm1 = vweird.f32 %v858_v3 }
 0x40d   : > { %v902_v30 = vor.u32 1.1754944e-38, %v901_v25  ;;  %vm900_vm3 = vcmp.eq.f32.partialorder %v899_v27, 8.507059e+37 }
 0x40e   : > { %v878_v13 = vmul.f32 %v1322_v63, %v877_v11 }
 0x410   : > { %v1324_v15 = vpop.eup %1323  ;;  %v879_v16 = vadd.f32 %v1322_v63, %v878_v13 }
 0x411   : > { %v1326_v17 = vpop.eup %1325  ;;  %v859_v18 = vadd.f32 1.0, %v1324_v15 }
 0x412   : > { %v883_v21 = vsel %vm882_vm14, %v1322_v63, %v879_v16  ;;  %v891_v22 = vmul.f32 %v1326_v17, %v858_v3  ;;  %vm896_vm0 = vweird.f32 %v1326_v17 }
 0x413   : > { %1327 = vrcp.f32 %v859_v18  ;;  %v888_v23 = vsel %vm885_vm15, %v887_v19, %v883_v21  ;;  %vm897_vm2 = vmor %vm895_vm1, %vm896_vm0  ;;  %v916_v36 = vand.u32 2147483648, %v859_v18  ;;  %v914_v38 = vand.u32 2147483647, %v859_v18 }
 0x414   : > { %927 = vperm.xlu0 %1289, %v888_v23   ;;  %v892_v24 = vsub.f32 1.0, %v891_v22  ;;  %vm910_vm5 = vweird.f32 %v859_v18 }
 0x415   : > { %v917_v40 = vor.u32 1.1754944e-38, %v916_v36  ;;  %vm915_vm7 = vcmp.eq.f32.partialorder %v914_v38, 8.507059e+37 }
 0x416   : > { %v893_v26 = vmul.f32 %v1326_v17, %v892_v24 }
 0x418   : > { %v894_v28 = vadd.f32 %v1326_v17, %v893_v26 }
 0x419   : > { %v1328_v29 = vpop.eup %1327 }
 0x41a   : > { %v898_v31 = vsel %vm897_vm2, %v1326_v17, %v894_v28  ;;  %v906_v33 = vmul.f32 %v1328_v29, %v859_v18  ;;  %vm911_vm4 = vweird.f32 %v1328_v29 }
 0x41b   : > { %v903_v34 = vsel %vm900_vm3, %v902_v30, %v898_v31  ;;  %vm912_vm6 = vmor %vm910_vm5, %vm911_vm4 }
 0x41c   : > { %932 = vperm.xlu1 %1290, %v903_v34   ;;  %v907_v35 = vsub.f32 1.0, %v906_v33 }
 0x41e   : > { %v908_v37 = vmul.f32 %v1328_v29, %v907_v35 }
 0x420   : > { %v909_v39 = vadd.f32 %v1328_v29, %v908_v37 }
 0x422   : > { %v913_v41 = vsel %vm912_vm6, %v1328_v29, %v909_v39 }
 0x423   : > { %v918_v32 = vsel %vm915_vm7, %v917_v40, %v913_v41 }
 0x424   : > { %937 = vperm.xlu0 %1289, %v918_v32  }
 0x466   : > { %v923_v42 = vpop.permute.xlu2 %922 }
 0x467   : > { %v940_v43 = vmul.f32 %v923_v42, %v1692_v8 }
 0x469   : > { %v944_v44 = vadd.f32 %v940_v43, %v1603_v2 }
 0x46b   : > { %v948_v45 = vmax.f32 %v944_v44, 0.0 }
 0x46d   : > { %952 = vst [vmem:[%s359_s22] sm:$0xff] %v948_v45 }
 0x486   : > { %v928_v46 = vpop.permute.xlu0 %927 }
 0x487   : > { %v941_v47 = vmul.f32 %v928_v46, %v1683_v53 }
 0x489   : > { %v945_v48 = vadd.f32 %v941_v47, %v1607_v4 }
 0x48b   : > { %v949_v49 = vmax.f32 %v945_v48, 0.0 }
 0x48d   : > { %953 = vst [vmem:[%s359_s22 + $0x8] sm:$0xff] %v949_v49 }
 0x48e   : > { %v933_v50 = vpop.permute.xlu1 %932 }
 0x48f   : > { %v942_v51 = vmul.f32 %v933_v50, %v1686_v57 }
 0x491   : > { %v946_v52 = vadd.f32 %v942_v51, %v1599_v0 }
 0x493   : > { %v950_v20 = vmax.f32 %v946_v52, 0.0 }
 0x495   : > { %954 = vst [vmem:[%s359_s22 + $0x10] sm:$0xff] %v950_v20 }
 0x496   : > { %v938_v2 = vpop.permute.xlu0 %937 }
 0x497   : > { %v943_v53 = vmul.f32 %v938_v2, %v1689_v5 }
 0x499   : > { %v947_v4 = vadd.f32 %v943_v53, %v1601_v1 }
 0x49b   : > { %v951_v8 = vmax.f32 %v947_v4, 0.0 }
 0x49d   : > { %955 = vst [vmem:[%s359_s22 + $0x18] sm:$0xff] %v951_v8 }
 0x49e   : > { %1416 = shalt.err (!%p1413_p8)
}
 0x49f   : > { %s1469_s16 = smov 128   ;;  %s1470_s22 = smov 8  }
 0x4a0   : > { %1208 = dma.vmem_to_hbm [thread:$0]  (%p1559_p5), %s970_s25, 512, %s972_s21, %s957_s26, %s1469_s16, %s1469_s16, %s1470_s22  }
 0x4a1 PF: > { %p1225_p9 = scmp.ge.s32.totalorder %s1459_s12, 2  ;;  %s986_s24 = sand.u32 1, %s1447_s30  }
 0x4a2   : > { %s987_s14 = scalar_lea.sflag [#allocation4], %s986_s24 }
 0x4a3   : > { %p1218_p10 = pnand %p1225_p9, %p1563_p6 }
 0x4a5   : > { %p1219_p11 = pneg %p1218_p10 }
 0x4a7   : > { %1442 = dma.done.wait (%p1219_p11), %s987_s14, 512  }
 0x4a8   : > { %1444 = vsyncadd (%p1219_p11), %s987_s14, 4294966784  ;;  %p21_p12 = scmp.ge.s32.totalorder %s1546_s15, 4   ;;  %s1783_s30 = smov %s1451_s10 }
 0x4a9   : > { %s1784_s10 = smov %s1455_s11  ;;  %s1785_s11 = smov %s1557_s18 }
 0x4aa   : > { %s1786_s12 = smov %s1546_s15  ;;  %23 = sbr.rel (!%p21_p12) target bundleno = 5 (0x5), region = 104 }
 0x4af   :  { %993 = vsyncpa [#allocation3], 1 }
 0x4b0   :  { %995 = vsyncpa [#allocation3 + $0x1], 1 }
 0x4b1   :  { %996 = vsyncpa [#allocation6], 1 }
 0x4b2   :  { %997 = vsyncpa [#allocation4], 1 }
 0x4b3   :  { %999 = vsyncpa [#allocation4 + $0x1], 1 }

</bundles_post_ra>
